<compile_context>
chip_gen: v7x
topology: tpu7x:2x2x1
jax: 0.10.0
libtpu: 0.0.40
codegen_flags: <defaults>
</compile_context>

<pallas_src>
import functools

import jax
import jax.numpy as jnp
from jax.experimental import pallas as pl
from jax.experimental.pallas import tpu as pltpu


def qkv_kernel(xt_ref, k_ref, wqv_ref, bqv_ref, v_out_ref, att_out_ref, *,
               v_lane_major, approx_reciprocal):
    # xt_ref : (1, C, Tq)  channel-major query tile of x (compute dtype)
    # k_ref  : (1, C, HW)  precomputed k = Wk@x + bk (compute dtype), resident
    # wqv_ref: (2C, C)     fused [Wq; Wv] (PyTorch (C_out, C_in) layout)
    # bqv_ref: (2C, 1)     fused [bq; bv] (f32)
    C = wqv_ref.shape[1]
    x_t = xt_ref[0]                       # (C, Tq)
    k = k_ref[0]                          # (C, HW)
    cdt = x_t.dtype                       # MXU compute dtype (bf16)

    # Fused q/v 1x1 convs, channel-major: (2C, C) @ (C, Tq) -> (2C, Tq), f32 acc.
    qv = jnp.dot(wqv_ref[...], x_t,
                 preferred_element_type=jnp.float32) + bqv_ref[...]
    v = qv[C:, :]                         # (C, Tq)
    # Slice BEFORE transposing: only the (C, Tq) q block goes through the XLU.
    q_rows = qv[:C, :].T                  # (Tq, C)

    # Scores (Tq, HW): bf16 MXU inputs, f32 accumulation.  No 1/sqrt(C) scale
    # (matches the PyTorch module -- do not "fix").
    s = jnp.dot(q_rows.astype(cdt), k, preferred_element_type=jnp.float32)

    # Row softmax in f32; the reciprocal goes to the otherwise-idle EUP slot.
    s_max = jnp.max(s, axis=-1, keepdims=True)
    e = jnp.exp(s - s_max)
    denom = jnp.sum(e, axis=-1, keepdims=True)
    if approx_reciprocal:
        att = e * pl.reciprocal(denom, approx=True)
    else:
        att = e / denom

    att_out_ref[0] = att.astype(att_out_ref.dtype)
    if v_lane_major:
        # C is a multiple of 128: store v directly as (Tq, C) -> (N, HW, C),
        # removing the host-side transpose (an extra full HBM read+write).
        v_out_ref[0] = v.T.astype(v_out_ref.dtype)
    else:
        v_out_ref[0] = v.astype(v_out_ref.dtype)


def _vmem_need_bytes(tq, HW, C, att_bytes, v_bytes):
    """Per-step VMEM footprint estimate (includes live f32 temporaries)."""
    att_out = 2 * tq * HW * att_bytes        # double-buffered att output tile
    f32_tmp = 3 * tq * HW * 4                # live f32 temps: s, e, pre-store att
    k_res = 2 * C * HW * 2                   # resident precomputed k (bf16, dbuf)
    x_tile = 2 * C * tq * 2                  # x query tile (bf16, dbuf)
    v_out = 2 * C * tq * v_bytes             # v output tile (dbuf)
    misc = ((2 * C) * tq * 4                 # fused qv f32 result
            + tq * C * (4 + 2)               # q transpose temp + bf16 q copy
            + 2 * (2 * C * C * 2 + 2 * C * 4))  # weights + biases (dbuf)
    return att_out + f32_tmp + k_res + x_tile + v_out + misc


def _pick_tq(HW, C, budget_bytes, att_bytes, v_bytes):
    """Largest power-of-two multiple of 128 that divides HW and fits the budget.

    Capped at 512: matches the 256-wide MXU M dimension on v6e/v7x without
    burning VMEM; on v5e the MXU is 128-wide so 128 is already native."""
    if HW % 128 != 0:
        return HW                            # small / odd spatial sizes: one tile
    tq = 128
    nxt = 256
    while (nxt <= min(HW, 512) and HW % nxt == 0
           and _vmem_need_bytes(nxt, HW, C, att_bytes, v_bytes) <= budget_bytes):
        tq = nxt
        nxt *= 2
    return tq


def qkv_block(x_nchw, wq, bq, wk, bk, wv, bv, *, tq=None,
              compute_dtype=jnp.bfloat16,
              v_dtype=jnp.float32, att_dtype=jnp.bfloat16,
              approx_reciprocal=True):
    """x_nchw: (N, C, H, W). wq/wk/wv: (C, C) squeezed 1x1-conv weights
    (PyTorch (C_out, C_in)); bq/bk/bv: (C,).
    Returns (x_v (N, HW, C), att (N, HW, HW)) -- same as the PyTorch module."""
    N, C, H, W = x_nchw.shape
    HW = H * W

    # Channel-major (N, C, HW): reshape only, no NCHW->NHWC round trip.
    x_f32 = x_nchw.reshape(N, C, HW).astype(jnp.float32)
    x_cm = x_f32.astype(compute_dtype)

    # k = Wk @ x + bk precomputed ONCE in XLA; consumed resident per batch
    # index instead of being recomputed for every query tile.
    k_cm = (jnp.einsum("oc,nci->noi", wk.astype(jnp.float32), x_f32)
            + bk.astype(jnp.float32)[None, :, None]).astype(compute_dtype)

    # Fused q/v conv weights and biases; channel-major 1x1 conv is just W @ x.
    w_qv = jnp.concatenate([wq, wv], axis=0).astype(compute_dtype)        # (2C, C)
    b_qv = jnp.concatenate([bq, bv], axis=0).reshape(2 * C, 1).astype(jnp.float32)

    att_bytes = jnp.dtype(att_dtype).itemsize
    v_bytes = jnp.dtype(v_dtype).itemsize

    # VMEM-aware tiling (v7x: 64 MiB physical VMEM vs 128 MiB on v5e/v6e).
    try:
        info = pltpu.get_tpu_info()
        vmem_cap = int(getattr(info, "vmem_capacity_bytes", 0)) or 64 * 1024 * 1024
    except Exception:
        vmem_cap = 64 * 1024 * 1024          # conservative (v7x) if query fails
    vmem_limit = max(32 * 1024 * 1024,
                     min(vmem_cap - 8 * 1024 * 1024, 112 * 1024 * 1024))
    budget = vmem_limit - 8 * 1024 * 1024    # headroom for compiler scratch/spill

    if tq is None:
        tq = _pick_tq(HW, C, budget, att_bytes, v_bytes)
    if HW % tq != 0 or not (tq % 128 == 0 or tq == HW):
        raise ValueError(f"tq={tq} must divide HW={HW} and be a multiple of 128 "
                         f"(or equal HW)")
    n_qt = HW // tq

    v_lane_major = (C % 128 == 0)

    xt_spec = pl.BlockSpec((1, C, tq), lambda n, qi: (n, 0, qi))
    k_spec = pl.BlockSpec((1, C, HW), lambda n, qi: (n, 0, 0))
    wqv_spec = pl.BlockSpec((2 * C, C), lambda n, qi: (0, 0))
    bqv_spec = pl.BlockSpec((2 * C, 1), lambda n, qi: (0, 0))
    att_spec = pl.BlockSpec((1, tq, HW), lambda n, qi: (n, qi, 0))
    if v_lane_major:
        v_shape = jax.ShapeDtypeStruct((N, HW, C), v_dtype)
        v_spec = pl.BlockSpec((1, tq, C), lambda n, qi: (n, qi, 0))
    else:
        v_shape = jax.ShapeDtypeStruct((N, C, HW), v_dtype)
        v_spec = pl.BlockSpec((1, C, tq), lambda n, qi: (n, 0, qi))

    cbytes = jnp.dtype(compute_dtype).itemsize
    cost = pl.CostEstimate(
        flops=int(2 * N * HW * C * (HW + 2 * C)),
        transcendentals=int(N * HW * HW),
        bytes_accessed=int(2 * N * C * HW * cbytes          # x tiles + resident k
                           + N * HW * HW * att_bytes        # att writeback (dominant)
                           + N * C * HW * v_bytes),         # v writeback
    )

    kernel = functools.partial(qkv_kernel, v_lane_major=v_lane_major,
                               approx_reciprocal=approx_reciprocal)

    v_out, att = pl.pallas_call(
        kernel,
        out_shape=(v_shape, jax.ShapeDtypeStruct((N, HW, HW), att_dtype)),
        grid=(N, n_qt),
        in_specs=[xt_spec, k_spec, wqv_spec, bqv_spec],
        out_specs=(v_spec, att_spec),
        compiler_params=pltpu.CompilerParams(
            dimension_semantics=("parallel", "parallel"),
            vmem_limit_bytes=int(vmem_limit)),
        cost_estimate=cost,
    )(x_cm, k_cm, w_qv, b_qv)

    # Match the PyTorch output layout for x_v: (N, HW, C).
    x_v = v_out if v_lane_major else jnp.transpose(v_out, (0, 2, 1))
    return x_v, att


def _reference(x_nchw, wq, bq, wk, bk, wv, bv):
    """Pure-JAX f32 reference mirroring the PyTorch forward."""
    N, C, H, W = x_nchw.shape
    HW = H * W
    x = jnp.transpose(x_nchw.reshape(N, C, HW), (0, 2, 1))     # (N, HW, C)
    q = x @ wq.T + bq
    k = x @ wk.T + bk
    v = x @ wv.T + bv
    s = jnp.einsum("nic,njc->nij", q, k)                        # (N, HW, HW)
    att = jax.nn.softmax(s, axis=-1)
    return v, att


if __name__ == "__main__":
    key = jax.random.PRNGKey(0)
    N, C, H, W = 2, 4, 16, 16

    k_x, k_wq, k_bq, k_wk, k_bk, k_wv, k_bv = jax.random.split(key, 7)
    x = jax.random.normal(k_x, (N, C, H, W), dtype=jnp.float32)

    # Conv1x1 weights at roughly PyTorch's default init scale.
    scale = 1.0 / (3.0 * C) ** 0.5
    wq = jax.random.normal(k_wq, (C, C), dtype=jnp.float32) * scale
    wk = jax.random.normal(k_wk, (C, C), dtype=jnp.float32) * scale
    wv = jax.random.normal(k_wv, (C, C), dtype=jnp.float32) * scale
    bq = jax.random.normal(k_bq, (C,), dtype=jnp.float32) * 0.1
    bk = jax.random.normal(k_bk, (C,), dtype=jnp.float32) * 0.1
    bv = jax.random.normal(k_bv, (C,), dtype=jnp.float32) * 0.1

    # tq=128 so the small test exercises the tiled (N, HW//Tq) grid path.
    x_v, att = qkv_block(x, wq, bq, wk, bk, wv, bv, tq=128)
    jax.block_until_ready((x_v, att))

    # Correctness vs. the f32 reference (loose tolerance: bf16 MXU inputs and
    # bf16 att output; approx EUP reciprocal in the softmax).
    x_v_ref, att_ref = _reference(x, wq, bq, wk, bk, wv, bv)
    att_f32 = att.astype(jnp.float32)
    assert x_v.shape == (N, H * W, C) and att.shape == (N, H * W, H * W)
    assert jnp.allclose(x_v, x_v_ref, atol=5e-2, rtol=5e-2)
    assert jnp.allclose(att_f32, att_ref, atol=5e-2, rtol=5e-2)
    assert jnp.allclose(jnp.sum(att_f32, axis=-1), 1.0, atol=1e-2)

    print("KERNEL_OK")
</pallas_src>

<mosaic_0001>
module attributes {stable_mosaic.version = 11 : i64} {
  func.func @qkv_kernel(%arg0: i32, %arg1: i32, %arg2: memref<1x4x128xbf16, #tpu.memory_space<vmem>>, %arg3: memref<1x4x256xbf16, #tpu.memory_space<vmem>>, %arg4: memref<8x4xbf16, #tpu.memory_space<vmem>>, %arg5: memref<8x1xf32, #tpu.memory_space<vmem>>, %arg6: memref<1x4x128xf32, #tpu.memory_space<vmem>>, %arg7: memref<1x128x256xbf16, #tpu.memory_space<vmem>>) attributes {dimension_semantics = [#tpu.dimension_semantics<parallel>, #tpu.dimension_semantics<parallel>], iteration_bounds = array<i64: 2, 2>, scalar_prefetch = 0 : i64, scratch_operands = 0 : i64, tpu.core_type = #tpu.core_type<tc>, window_params = [{transform_indices = @transform_0, window_bounds = array<i64: 1, 4, 128>}, {transform_indices = @transform_1, window_bounds = array<i64: 1, 4, 256>}, {pipeline_mode = #tpu.pipeline_mode<synchronous>, transform_indices = @transform_2, window_bounds = array<i64: 8, 4>}, {pipeline_mode = #tpu.pipeline_mode<synchronous>, transform_indices = @transform_3, window_bounds = array<i64: 8, 1>}, {transform_indices = @transform_4, window_bounds = array<i64: 1, 4, 128>}, {transform_indices = @transform_5, window_bounds = array<i64: 1, 128, 256>}]} {
    %c0 = arith.constant 0 : index
    %c0_0 = arith.constant 0 : index
    %c0_1 = arith.constant 0 : index
    %0 = vector.load %arg2[%c0, %c0_0, %c0_1] : memref<1x4x128xbf16, #tpu.memory_space<vmem>>, vector<1x4x128xbf16>
    %1 = vector.shape_cast %0 : vector<1x4x128xbf16> to vector<4x128xbf16>
    %c0_2 = arith.constant 0 : index
    %c0_3 = arith.constant 0 : index
    %c0_4 = arith.constant 0 : index
    %2 = vector.load %arg3[%c0_2, %c0_3, %c0_4] : memref<1x4x256xbf16, #tpu.memory_space<vmem>>, vector<1x4x256xbf16>
    %3 = vector.shape_cast %2 : vector<1x4x256xbf16> to vector<4x256xbf16>
    %c0_5 = arith.constant 0 : index
    %c0_6 = arith.constant 0 : index
    %4 = vector.load %arg4[%c0_5, %c0_6] : memref<8x4xbf16, #tpu.memory_space<vmem>>, vector<8x4xbf16>
    %cst = arith.constant dense<0.000000e+00> : vector<8x128xf32>
    %5 = tpu.matmul %4, %1, %cst {dimension_numbers = #tpu.dot_dimension_numbers<[1], [0], [0], [1], [0, 0, 1, 1], [], []>} : vector<8x4xbf16>, vector<4x128xbf16>, vector<8x128xf32> -> vector<8x128xf32>
    %c0_7 = arith.constant 0 : index
    %c0_8 = arith.constant 0 : index
    %6 = vector.load %arg5[%c0_7, %c0_8] : memref<8x1xf32, #tpu.memory_space<vmem>>, vector<8x1xf32>
    %7 = vector.broadcast %6 : vector<8x1xf32> to vector<8x128xf32>
    %8 = arith.addf %5, %7 : vector<8x128xf32>
    %9 = vector.extract_strided_slice %8 {offsets = [4, 0], sizes = [4, 128], strides = [1, 1]} : vector<8x128xf32> to vector<4x128xf32>
    %10 = vector.extract_strided_slice %8 {offsets = [0, 0], sizes = [4, 128], strides = [1, 1]} : vector<8x128xf32> to vector<4x128xf32>
    %11 = tpu.transpose %10, [1, 0] : vector<4x128xf32> -> vector<128x4xf32>
    %12 = arith.truncf %11 : vector<128x4xf32> to vector<128x4xbf16>
    %cst_9 = arith.constant dense<0.000000e+00> : vector<128x256xf32>
    %13 = tpu.matmul %12, %3, %cst_9 {dimension_numbers = #tpu.dot_dimension_numbers<[1], [0], [0], [1], [0, 0, 1, 1], [], []>} : vector<128x4xbf16>, vector<4x256xbf16>, vector<128x256xf32> -> vector<128x256xf32>
    %cst_10 = arith.constant dense<0xFF800000> : vector<128xf32>
    %14 = vector.multi_reduction <maximumf>, %13, %cst_10 [1] : vector<128x256xf32> to vector<128xf32>
    %15 = vector.shape_cast %14 : vector<128xf32> to vector<128x1xf32>
    %16 = vector.broadcast %15 : vector<128x1xf32> to vector<128x256xf32>
    %17 = arith.subf %13, %16 : vector<128x256xf32>
    %18 = math.exp %17 : vector<128x256xf32>
    %cst_11 = arith.constant dense<0.000000e+00> : vector<128xf32>
    %19 = vector.multi_reduction <add>, %18, %cst_11 [1] : vector<128x256xf32> to vector<128xf32>
    %20 = vector.shape_cast %19 : vector<128xf32> to vector<128x1xf32>
    %21 = tpu.reciprocal %20 {approx = true} : vector<128x1xf32> -> vector<128x1xf32>
    %22 = vector.broadcast %21 : vector<128x1xf32> to vector<128x256xf32>
    %23 = arith.mulf %18, %22 : vector<128x256xf32>
    %24 = arith.truncf %23 : vector<128x256xf32> to vector<128x256xbf16>
    %c0_12 = arith.constant 0 : index
    %c0_13 = arith.constant 0 : index
    %c0_14 = arith.constant 0 : index
    %25 = vector.load %arg7[%c0_12, %c0_13, %c0_14] : memref<1x128x256xbf16, #tpu.memory_space<vmem>>, vector<1x128x256xbf16>
    %26 = vector.shape_cast %25 : vector<1x128x256xbf16> to vector<128x256xbf16>
    %27 = vector.shape_cast %24 : vector<128x256xbf16> to vector<1x128x256xbf16>
    tpu.vector_store %arg7[%c0_12, %c0_13, %c0_14], %27 {strides = array<i32>} : memref<1x128x256xbf16, #tpu.memory_space<vmem>>, vector<1x128x256xbf16>,
    %c0_15 = arith.constant 0 : index
    %c0_16 = arith.constant 0 : index
    %c0_17 = arith.constant 0 : index
    %28 = vector.load %arg6[%c0_15, %c0_16, %c0_17] : memref<1x4x128xf32, #tpu.memory_space<vmem>>, vector<1x4x128xf32>
    %29 = vector.shape_cast %28 : vector<1x4x128xf32> to vector<4x128xf32>
    %30 = vector.shape_cast %9 : vector<4x128xf32> to vector<1x4x128xf32>
    tpu.vector_store %arg6[%c0_15, %c0_16, %c0_17], %30 {strides = array<i32>} : memref<1x4x128xf32, #tpu.memory_space<vmem>>, vector<1x4x128xf32>,
    return
  }
  func.func @transform_0(%arg0: i32, %arg1: i32) -> (i32, i32, i32) {
    %c0_i32 = arith.constant 0 : i32
    %c0_i32_0 = arith.constant 0 : i32
    return %arg0, %c0_i32, %arg1 : i32, i32, i32
  }
  func.func @transform_1(%arg0: i32, %arg1: i32) -> (i32, i32, i32) {
    %c0_i32 = arith.constant 0 : i32
    %c0_i32_0 = arith.constant 0 : i32
    %c0_i32_1 = arith.constant 0 : i32
    return %arg0, %c0_i32, %c0_i32_0 : i32, i32, i32
  }
  func.func @transform_2(%arg0: i32, %arg1: i32) -> (i32, i32) {
    %c0_i32 = arith.constant 0 : i32
    %c0_i32_0 = arith.constant 0 : i32
    %c0_i32_1 = arith.constant 0 : i32
    return %c0_i32, %c0_i32_0 : i32, i32
  }
  func.func @transform_3(%arg0: i32, %arg1: i32) -> (i32, i32) {
    %c0_i32 = arith.constant 0 : i32
    %c0_i32_0 = arith.constant 0 : i32
    %c0_i32_1 = arith.constant 0 : i32
    return %c0_i32, %c0_i32_0 : i32, i32
  }
  func.func @transform_4(%arg0: i32, %arg1: i32) -> (i32, i32, i32) {
    %c0_i32 = arith.constant 0 : i32
    %c0_i32_0 = arith.constant 0 : i32
    return %arg0, %c0_i32, %arg1 : i32, i32, i32
  }
  func.func @transform_5(%arg0: i32, %arg1: i32) -> (i32, i32, i32) {
    %c0_i32 = arith.constant 0 : i32
    %c0_i32_0 = arith.constant 0 : i32
    return %arg0, %arg1, %c0_i32 : i32, i32, i32
  }
}

</mosaic_0001>

<bundles_post_ra>
// kernel: tpu_custom_call.1
= control target key start
LH: loop header
LB: loop body
LE: loop exit
PB: predicated region body
PF: predicated region fallthrough
CT: control target
= control target key end

     0   :  { %s2153_s0 = inlined_call_operand.vmem [shape: bf16[2,4,256], index: 0, kind: input, shape index: {}]   ;;  %s2154_s1 = inlined_call_operand.hbm [shape: bf16[2,4,256], index: 1, kind: input, shape index: {}]   ;;  %s2155_s2 = inlined_call_operand.vmem [shape: bf16[8,4], index: 2, kind: input, shape index: {}]   ;;  %s2156_s3 = inlined_call_operand.vmem [shape: f32[8,1], index: 3, kind: input, shape index: {}]   ;;  %s2157_s4 = inlined_call_operand.hbm [shape: f32[2,4,256], index: 4, kind: output, shape index: {0}]   ;;  %s2158_s5 = inlined_call_operand.hbm [shape: bf16[2,256,256], index: 5, kind: output, shape index: {1}]  }
   0x1   :  { %2163 = sst [smem:[#allocation14_spill]] %s2153_s0 }
   0x2   :  { %2164 = sst [smem:[#allocation15_spill]] %s2154_s1 }
   0x3   :  { %11 = vsyncpa [#allocation3], 0 }
   0x4   :  { %13 = vsyncpa [#allocation3 + $0x1], 0 }
   0x5   :  { %14 = vsyncpa [#allocation4], 0 }
   0x6   :  { %16 = vsyncpa [#allocation4 + $0x1], 0 }
   0x7   :  { %17 = vsyncpa [#allocation7], 0 }
   0x8   :  { %19 = vsyncpa [#allocation7 + $0x1], 0  ;;  %s1590_s18 = smov 0   ;;  %s1592_s19 = smov 0  }
   0x9   :  { %s1594_s20 = smov 0   ;;  %s1596_s21 = smov 0  }
   0xa   :  { %s1598_s22 = smov 0   ;;  %s1600_s23 = smov 0  }
   0xb   :  { %s1602_s24 = smov 0   ;;  %s1604_s25 = smov 0  }
   0xc   :  { %s1606_s26 = smov 0   ;;  %s1608_s27 = smov 0  }
   0xd   :  { %s1610_s28 = smov 0  }
   0xe LB: > { %2165 = sst [smem:[#allocation11_spill]] %s1546_s27  ;;  %s1079_s29 = sadd.s32 4294967295, %s1550_s28   ;;  %s1550_s28 = sphi %s1610_s28, %s25_s28   ;;  %s1546_s27 = sphi %s1608_s27, %s2181_s27   ;;  %s1542_s26 = sphi %s1606_s26, %s2189_s26   ;;  %s1538_s25 = sphi %s1604_s25, %s2179_s25   ;;  %s1534_s24 = sphi %s1602_s24, %s2188_s24   ;;  %s1530_s23 = sphi %s1600_s23, %s2187_s23   ;;  %s1526_s22 = sphi %s1598_s22, %s2186_s22   ;;  %s1522_s21 = sphi %s1596_s21, %s2185_s21   ;;  %s1518_s20 = sphi %s1594_s20, %s2184_s20   ;;  %s1514_s19 = sphi %s1592_s19, %s2183_s19   ;;  %s1510_s18 = sphi %s1590_s18, %s2182_s18  }
   0xf   : > { %s1080_s30 = sadd.s32 4294967294, %s1550_s28   ;;  %s34_s6 = sadd.s32 1, %s1542_s26 }
  0x10   : > { %s37_s7 = sadd.s32 1, %s1546_s27  ;;  %p35_p0 = scmp.ge.s32.totalorder %s34_s6, 2 }
  0x11   : > { %s72_s8 = sadd.s32 1, %s1530_s23  ;;  %p79_p1 = scmp.ne.s32.totalorder %s1530_s23, %s1526_s22 }
  0x12   : > { %p80_p2 = scmp.eq.s32.totalorder %s1550_s28, 0  ;;  %s2191_s6 = smov (%p35_p0, %s34_s6), 0 }
  0x13   : > { %2166 = sst [smem:[#allocation12_spill]] %s2191_s6  ;;  %s2193_s7 = smov (!%p35_p0, %s37_s7), %s1546_s27 }
  0x14   : > { %p1654_p3 = por %p80_p2, %p79_p1  ;;  %p85_p4 = scmp.ne.s32.totalorder %s1526_s22, %s1522_s21 }
  0x15   : > { %p39_p5 = scmp.ge.s32.totalorder %s2193_s7, 2  ;;  %p86_p6 = scmp.eq.s32.totalorder %s1079_s29, 0 }
  0x16   : > { %s138_s10 = ssub.s32 %s1542_s26, %s2191_s6  ;;  %s142_s11 = sadd.s32 1, %s1518_s20 }
  0x17   : > { %s2195_s7 = smov (%p39_p5, %s2193_s7), 0  ;;  %p1664_p7 = por %p86_p6, %p85_p4 }
  0x18   : > { %2168 = sst [smem:[#allocation13_spill]] %s2195_s7  ;;  %p152_p8 = scmp.ne.s32.totalorder %s1518_s20, %s1514_s19 }
  0x19   : > { %s69_s13 = ssub.s32 %s1546_s27, %s2195_s7  ;;  %p153_p9 = scmp.eq.s32.totalorder %s1079_s29, 3 }
  0x1a   : > { %p70_p10 = scmp.eq.s32.totalorder %s69_s13, 0  ;;  %s139_s14 = sor.u32 %s138_s10, %s69_s13 }
  0x1b   : > { %p140_p11 = scmp.eq.s32.totalorder %s139_s14, 0  ;;  %p1672_p12 = por %p153_p9, %p152_p8 }
  0x1c   : > { %s1677_s16 = scalar_select %p70_p10, %s1530_s23, %s72_s8  }
  0x1d   : > { %s2170_s15 = scalar_select %p1672_p12, 1, 0 }
  0x1e   : > { %s1680_s17 = scalar_select %p140_p11, %s1518_s20, %s142_s11  }
  0x1f   : > { %p158_p13 = scmp.ne.s32.totalorder %s1514_s19, %s1510_s18  ;;  %p159_p0 = scmp.eq.s32.totalorder %s1080_s30, 3 }
  0x20   : > { %p1174_p1 = scmp.lt.s32.totalorder %s1550_s28, 4  ;;  %s224_s29 = sand.u32 1, %s1530_s23  }
  0x21   : > { %p1685_p2 = por %p159_p0, %p158_p13  ;;  %s1083_s10 = sshll.u32 %s224_s29, 2 }
  0x22   : > { %s1129_s13 = sshll.u32 %s1546_s27, 6  ;;  %s2172_s1 = sld [smem:[#allocation15_spill]] }
  0x23   : > { %s2171_s21 = scalar_select %p1685_p2, 1, 0 }
  0x24   : > { %s228_s8 = scalar_lea.vmem [#allocation2], %s1083_s10  ;;  %p1700_p4 = pnand %p1174_p1, %p1654_p3 }
  0x25   : > { %s236_s11 = sshll.u32 %s228_s8, 4  ;;  %s225_s7 = scalar_lea.sflag [#allocation3], %s224_s29  ;;  %s1696_s11 = int_to_ptr.vmem [resolvable:$true] %s236_s11 }
  0x26   : > { %p1368_p9 = pneg %p1700_p4 }
  0x28   : > { %s1694_s6 = scalar_lea.hbm %s2172_s1, %s1129_s13  ;;  %s1371_s9 = scalar_lea.hbm %s2172_s1, 128 }
  0x29   : > { %s1366_s13 = scalar_lea.hbm %s1694_s6, 64  ;;  %p1372_p3 = scmp.lt.u32.totalorder %s1694_s6, %s2172_s1 }
  0x2a   : > { %p1367_p8 = scmp.ne.s32.totalorder %s1694_s6, %s1366_s13  ;;  %p1373_p13 = scmp.lt.u32.totalorder %s1371_s9, %s1366_s13 }
  0x2b   : > { %p1375_p1 = scmp.lt.u32.totalorder %s1366_s13, %s1694_s6 }
  0x2c   : > { %p1369_p10 = pnand %p1368_p9, %p1367_p8  ;;  %p1374_p0 = por %p1373_p13, %p1372_p3 }
  0x2e   : > { %p1370_p11 = pneg %p1369_p10  ;;  %p1376_p5 = por %p1375_p1, %p1374_p0 }
  0x30   : > { %p1377_p6 = pnand %p1376_p5, %p1370_p11 }
  0x32   : > { %1380 = shalt.err (!%p1377_p6)
}
  0x33   : > { %s1381_s29 = scalar_lea.vmem %s1696_s11, 64  ;;  %s1552_s10 = smov [#allocation2]  }
  0x34   : > { %p1382_p8 = scmp.ne.s32.totalorder %s1696_s11, %s1381_s29  ;;  %s1386_s14 = sshll.u32 %s1552_s10, 4  ;;  %s1387_s14 = int_to_ptr.vmem [resolvable:$false] %s1386_s14 }
  0x35   : > { %s1388_s27 = scalar_lea.vmem %s1387_s14, 128  ;;  %p1389_p12 = scmp.lt.s32.totalorder %s1696_s11, %s1387_s14 }
  0x36   : > { %p1384_p10 = pnand %p1382_p8, %p1368_p9  ;;  %p1390_p3 = scmp.lt.s32.totalorder %s1388_s27, %s1381_s29 }
  0x38   : > { %p1385_p2 = pneg %p1384_p10  ;;  %p1391_p13 = por %p1390_p3, %p1389_p12 }
  0x3a   : > { %p1392_p0 = pnand %p1391_p13, %p1385_p2 }
  0x3c   : > { %1395 = shalt.err (!%p1392_p0)
}
  0x3d   : > { %1166 = dma.hbm_to_vmem [thread:$0]  (!%p1700_p4), %s1694_s6, 64, %s1696_s11, %s225_s7  }
  0x3e   : > { %p2174_p5 = scmp.lt.s32.totalorder %s1550_s28, 5  ;;  %p2175_p6 = scmp.ge.s32.totalorder %s1550_s28, 1 }
  0x40   : > { %p242_p9 = pnand %p2175_p6, %p2174_p5 }
  0x41   : > { %s247_s13 = sand.u32 (!%p242_p9), 1, %s1526_s22  }
  0x42   : > { %245 = sbr.rel (%p242_p9) target bundleno = 1043 (0x413), region = 36  ;;  %s1736_s9 = sshll.u32 (!%p242_p9), %s247_s13, 2 }
  0x43   : > { %s248_s8 = scalar_lea.sflag (!%p242_p9), [#allocation3], %s247_s13  ;;  %s251_s29 = scalar_lea.vmem (!%p242_p9), [#allocation2], %s1736_s9 }
  0x49   : > { %1497 = dma.done.wait (%p1664_p7), %s248_s8, 64  }
  0x4a   : > { %1499 = vsyncadd (%p1664_p7), %s248_s8, 4294967232  ;;  %p291_p12 = scmp.lt.s32.totalorder %s1538_s25, 1  ;;  %p293_p2 = scmp.lt.s32.totalorder %s1534_s24, 1  ;;  %v1553_v0 = vmov 0.0   ;;  %vm1554_vm0 = vmmov 0   ;;  %v1555_v1 = vmov 0  }
  0x4b   : > { %1149 = vmatprep.subr.bf16.mxu0 %v1553_v0  ;;  %1151 = vmatprep.mubr.msk.bf16.mxu0 %vm1554_vm0, %v1553_v0  ;;  %vm314_vm1 = vcmask 1041408   ;;  %s2176_s0 = sld [smem:[#allocation14_spill]]  ;;  %v304_v2 = vld [vmem:[%s2156_s3] sm:$0xff]  ;;  %vm310_vm2 = vcmask 31744   ;;  %p2177_p4 = scmp.ne.s32.totalorder %s2170_s15, 0 }
  0x4c   : > { %s292_s6 = scalar_select %p291_p12, %s1538_s25, 1  ;;  %1269 = vset.pattern.permute.xlu0 %v1555_v1  ;;  %499 = vmatprep.mubr.bf16.mxu1 %v1555_v1  ;;  %v303_v5 = vld [vmem:[%s2155_s2] sm:$0xf] }
  0x4d   : > { %s294_s11 = scalar_select %p293_p2, %s1534_s24, 1  ;;  %307 = vperm.xlu0 %1269, %v304_v2   ;;  %v1093_v6 = vld.sshfl [vmem:[%s251_s29] sm:$0x33 pattern:$0x76325410] }
  0x4e   : > { %s1090_s30 = sshll.u32 %s292_s6, 1  ;;  %v406_v7 = vcombine.high %v1093_v6, %v1093_v6  ;;  %v432_v8 = vsel %vm314_vm1, %v1093_v6, 0  ;;  %s1761_s6 = sand.u32 1, %s1514_s19  }
  0x4f   : > { %s296_s12 = sadd.s32 %s1090_s30, %s294_s11  ;;  %s1088_s11 = sshll.u32 %s1761_s6, 2 }
  0x50   : > { %s1091_s7 = sshll.u32 %s296_s12, 1  ;;  %1155 = vmatprep.subr.msk.bf16.mxu1 %vm314_vm1, %v406_v7  ;;  %s1764_s1 = scalar_lea.vmem [#allocation5], %s1088_s11 }
  0x51   : > { %s298_s27 = scalar_lea.vmem %s2176_s0, %s1091_s7  ;;  %1156 = vmatpush1.bf16.msra.mxu1 %v432_v8  ;;  %s1121_s29 = sshll.u32 %s1538_s25, 1 }
  0x52   : > { %v301_v3 = vld [vmem:[%s298_s27] sm:$0x3]  ;;  %s920_s30 = sadd.s32 %s1534_s24, %s1121_s29  ;;  %s924_s7 = sshll.u32 %s1764_s1, 4  ;;  %s925_s7 = int_to_ptr.vmem [resolvable:$true] %s924_s7 }
  0x53   : > { %v316_v4 = vsel %vm314_vm1, %v301_v3, 0  ;;  %s1122_s12 = sshll.u32 %s920_s30, 6  ;;  %s904_s13 = scalar_lea.sflag [#allocation4], %s1761_s6 }
  0x54   : > { %1150 = vmatpush3.bf16.msra.mxu0 %v316_v4  ;;  %s2011_s27 = scalar_lea.hbm %s2157_s4, %s1122_s12  ;;  %s1396_s9 = scalar_lea.vmem %s925_s7, 64 }
  0x55   : > { %1094 = vmatprep.subr.msk.bf16.mxu0 %vm314_vm1, %v406_v7  ;;  %p1397_p7 = scmp.ne.s32.totalorder %s925_s7, %s1396_s9  ;;  %s1556_s8 = smov [#allocation5]  }
  0x56   : > { %s1400_s11 = sshll.u32 %s1556_s8, 4  ;;  %s1401_s11 = int_to_ptr.vmem [resolvable:$false] %s1400_s11 }
  0x57   : > { %1152 = vmatmul.mubr.msk.bf16.vlgmr.msra.gmra.mrb[0].mxu0 %vm310_vm2, %v303_v5  ;;  %p1398_p11 = pnand %p1397_p7, %p2177_p4  ;;  %s1402_s0 = scalar_lea.vmem %s1401_s11, 128 }
  0x58   : > { %469 = vmatprep.mubr.bf16.mxu0 %v1555_v1  ;;  %438 = vmatpush1.bf16.msra.mxu0 %v432_v8  ;;  %p1403_p8 = scmp.lt.s32.totalorder %s925_s7, %s1401_s11  ;;  %p1404_p10 = scmp.lt.s32.totalorder %s1402_s0, %s1396_s9 }
  0x59   : > { %p1399_p1 = pneg %p1398_p11 }
  0x5a   : > { %p1405_p3 = por %p1404_p10, %p1403_p8 }
  0x5c   : > { %p1406_p13 = pnand %p1405_p3, %p1399_p1 }
  0xcc   : > { %v308_v9 = vpop.permute.xlu0 %307 }
 0x12a   : > { %v352_v10 = vpop.f32.mrb[0].mxu0 }
 0x12b   : > { %v353_v11 = vadd.f32 %v352_v10, %v308_v9  ;;  %v1153_v12 = vpop.f32.mrb[1].mxu0 }
 0x12c   : > { %v355_v13 = vpop.f32.mrb[2].mxu0 }
 0x12d   : > { %902 = vst [vmem:[%s1764_s1 - $0x4] sm:$0xf0] %v353_v11  ;;  %358 = vxpose.xlu0.b32.start.end [1/1] (short) %v353_v11, 128  ;;  %v1154_v14 = vpop.f32.mrb[3].mxu0 }
 0x1ad   : > { %v374_v15 = vpop.trf.xlu0 }
 0x1b1   : > { %v375_v16 = vpop.trf.xlu0 }
 0x1b2   : > { %v390_v17 = vpack.c.bf16 %v375_v16, %v374_v15 }
 0x1b4   : > { %1095 = vmatmul.mubr.msk.bf16.vlgmr.msra.gmra.mrb[4].mxu0 %vm310_vm2, %v390_v17 }
 0x1b5   : > { %v376_v18 = vpop.trf.xlu0  ;;  %479 = vmatprep.mubr.bf16.mxu0 %v1555_v1 }
 0x1b9   : > { %v377_v19 = vpop.trf.xlu0 }
 0x1ba   : > { %v391_v20 = vpack.c.bf16 %v377_v19, %v376_v18 }
 0x1bc   : > { %1096 = vmatmul.mubr.msk.bf16.gmra.mrb[8].mxu0 %vm310_vm2, %v391_v20 }
 0x1bd   : > { %v378_v21 = vpop.trf.xlu0  ;;  %489 = vmatprep.mubr.bf16.mxu0 %v1555_v1 }
 0x1c1   : > { %v379_v22 = vpop.trf.xlu0 }
 0x1c2   : > { %v392_v23 = vpack.c.bf16 %v379_v22, %v378_v21 }
 0x1c4   : > { %1097 = vmatmul.mubr.msk.bf16.gmra.mrb[12].mxu0 %vm310_vm2, %v392_v23 }
 0x1c5   : > { %v380_v24 = vpop.trf.xlu0 }
 0x1c9   : > { %v381_v25 = vpop.trf.xlu0 }
 0x1ca   : > { %v393_v26 = vpack.c.bf16 %v381_v25, %v380_v24 }
 0x1cc   : > { %1098 = vmatmul.mubr.msk.bf16.vlgmr.msra.gmra.mrb[0].mxu1 %vm310_vm2, %v393_v26 }
 0x1cd   : > { %v382_v27 = vpop.trf.xlu0  ;;  %509 = vmatprep.mubr.bf16.mxu1 %v1555_v1 }
 0x1d1   : > { %v383_v28 = vpop.trf.xlu0 }
 0x1d2   : > { %v394_v29 = vpack.c.bf16 %v383_v28, %v382_v27 }
 0x1d4   : > { %1099 = vmatmul.mubr.msk.bf16.gmra.mrb[4].mxu1 %vm310_vm2, %v394_v29 }
 0x1d5   : > { %v384_v30 = vpop.trf.xlu0  ;;  %519 = vmatprep.mubr.bf16.mxu1 %v1555_v1 }
 0x1d9   : > { %v385_v31 = vpop.trf.xlu0 }
 0x1da   : > { %v395_v32 = vpack.c.bf16 %v385_v31, %v384_v30 }
 0x1dc   : > { %1100 = vmatmul.mubr.msk.bf16.gmra.mrb[8].mxu1 %vm310_vm2, %v395_v32 }
 0x1dd   : > { %v386_v33 = vpop.trf.xlu0  ;;  %529 = vmatprep.mubr.bf16.mxu1 %v1555_v1 }
 0x1e1   : > { %v387_v34 = vpop.trf.xlu0 }
 0x1e2   : > { %v396_v35 = vpack.c.bf16 %v387_v34, %v386_v33 }
 0x1e4   : > { %1101 = vmatmul.mubr.msk.bf16.gmra.mrb[12].mxu1 %vm310_vm2, %v396_v35 }
 0x1e5   : > { %v388_v36 = vpop.trf.xlu0  ;;  %539 = vmatprep.mubr.bf16.mxu1 %v1555_v1 }
 0x1e9   : > { %v389_v37 = vpop.trf.xlu0 }
 0x1ea   : > { %v397_v38 = vpack.c.bf16 %v389_v37, %v388_v36 }
 0x1ec   : > { %1102 = vmatmul.mubr.msk.bf16.gmra.mrb[16].mxu1 %vm310_vm2, %v397_v38 }
 0x287   : > { %v1781_v39 = vpop.f32.mrb[4].mxu0 }
 0x288   : > { %v1783_v40 = vpop.f32.mrb[5].mxu0 }
 0x289   : > { %v1785_v41 = vpop.f32.mrb[6].mxu0  ;;  %v550_v42 = vmax.f32 %v1781_v39, %v1783_v40 }
 0x28a   : > { %v1789_v43 = vpop.f32.mrb[7].mxu0 }
 0x28b   : > { %551 = vmax.xlane.f32.xlu1 %v550_v42  ;;  %v553_v44 = vmax.f32 %v1785_v41, %v1789_v43 }
 0x28f   : > { %554 = vmax.xlane.f32.xlu1 %v553_v44  ;;  %v1793_v45 = vpop.f32.mrb[8].mxu0 }
 0x290   : > { %v1795_v46 = vpop.f32.mrb[9].mxu0 }
 0x291   : > { %v1797_v47 = vpop.f32.mrb[10].mxu0  ;;  %v556_v48 = vmax.f32 %v1793_v45, %v1795_v46 }
 0x292   : > { %v1801_v49 = vpop.f32.mrb[11].mxu0 }
 0x293   : > { %557 = vmax.xlane.f32.xlu1 %v556_v48  ;;  %v559_v50 = vmax.f32 %v1797_v47, %v1801_v49 }
 0x297   : > { %560 = vmax.xlane.f32.xlu1 %v559_v50  ;;  %v1805_v51 = vpop.f32.mrb[12].mxu0 }
 0x298   : > { %v1807_v52 = vpop.f32.mrb[13].mxu0 }
 0x299   : > { %v1809_v53 = vpop.f32.mrb[14].mxu0  ;;  %v562_v54 = vmax.f32 %v1805_v51, %v1807_v52 }
 0x29a   : > { %v1813_v55 = vpop.f32.mrb[15].mxu0 }
 0x29b   : > { %v565_v56 = vmax.f32 %v1809_v53, %v1813_v55  ;;  %563 = vmax.xlane.f32.xlu1 %v562_v54 }
 0x29f   : > { %v1817_v57 = vpop.f32.mrb[0].mxu1  ;;  %566 = vmax.xlane.f32.xlu1 %v565_v56 }
 0x2a0   : > { %v1819_v58 = vpop.f32.mrb[1].mxu1 }
 0x2a1   : > { %v1821_v59 = vpop.f32.mrb[2].mxu1  ;;  %v568_v60 = vmax.f32 %v1817_v57, %v1819_v58 }
 0x2a2   : > { %v1825_v61 = vpop.f32.mrb[3].mxu1 }
 0x2a3   : > { %569 = vmax.xlane.f32.xlu1 %v568_v60  ;;  %v571_v62 = vmax.f32 %v1821_v59, %v1825_v61 }
 0x2a7   : > { %v1829_v63 = vpop.f32.mrb[4].mxu1  ;;  %572 = vmax.xlane.f32.xlu1 %v571_v62 }
 0x2a8   : > { %v1831_v0 = vpop.f32.mrb[5].mxu1 }
 0x2a9   : > { %v1833_v1 = vpop.f32.mrb[6].mxu1  ;;  %v574_v2 = vmax.f32 %v1829_v63, %v1831_v0 }
 0x2aa   : > { %v1837_v3 = vpop.f32.mrb[7].mxu1 }
 0x2ab   : > { %575 = vmax.xlane.f32.xlu1 %v574_v2  ;;  %v577_v4 = vmax.f32 %v1833_v1, %v1837_v3 }
 0x2ad   : > { %578 = vmax.xlane.f32.xlu0 %v577_v4 }
 0x2af   : > { %v1841_v5 = vpop.f32.mrb[8].mxu1 }
 0x2b0   : > { %v1843_v6 = vpop.f32.mrb[9].mxu1 }
 0x2b1   : > { %v1845_v7 = vpop.f32.mrb[10].mxu1  ;;  %v580_v8 = vmax.f32 %v1841_v5, %v1843_v6 }
 0x2b2   : > { %v1849_v9 = vpop.f32.mrb[11].mxu1 }
 0x2b3   : > { %581 = vmax.xlane.f32.xlu1 %v580_v8  ;;  %v583_v10 = vmax.f32 %v1845_v7, %v1849_v9 }
 0x2b7   : > { %v1853_v11 = vpop.f32.mrb[12].mxu1  ;;  %584 = vmax.xlane.f32.xlu1 %v583_v10 }
 0x2b8   : > { %v1855_v12 = vpop.f32.mrb[13].mxu1 }
 0x2b9   : > { %v1857_v13 = vpop.f32.mrb[14].mxu1  ;;  %v586_v14 = vmax.f32 %v1853_v11, %v1855_v12 }
 0x2ba   : > { %v1861_v15 = vpop.f32.mrb[15].mxu1 }
 0x2bb   : > { %587 = vmax.xlane.f32.xlu1 %v586_v14  ;;  %v589_v16 = vmax.f32 %v1857_v13, %v1861_v15 }
 0x2bf   : > { %v1865_v17 = vpop.f32.mrb[16].mxu1  ;;  %590 = vmax.xlane.f32.xlu1 %v589_v16 }
 0x2c0   : > { %v1867_v18 = vpop.f32.mrb[17].mxu1 }
 0x2c1   : > { %v1869_v19 = vpop.f32.mrb[18].mxu1  ;;  %v592_v20 = vmax.f32 %v1865_v17, %v1867_v18 }
 0x2c2   : > { %v1873_v21 = vpop.f32.mrb[19].mxu1 }
 0x2c3   : > { %v595_v22 = vmax.f32 %v1869_v19, %v1873_v21  ;;  %593 = vmax.xlane.f32.xlu1 %v592_v20 }
 0x2c7   : > { %596 = vmax.xlane.f32.xlu1 %v595_v22 }
 0x318   : > { %v552_v23 = vpop.xlane.xlu1 %551 }
 0x319   : > { %v598_v24 = vsub.f32 %v1781_v39, %v552_v23  ;;  %v599_v25 = vsub.f32 %v1783_v40, %v552_v23 }
 0x31b   : > { %v630_v26 = vmul.f32 1.442695, %v598_v24  ;;  %v632_v27 = vmul.f32 1.442695, %v599_v25 }
 0x31c   : > { %v555_v28 = vpop.xlane.xlu1 %554 }
 0x31d   : > { %1270 = vpow2.f32 %v630_v26  ;;  %v600_v29 = vsub.f32 %v1785_v41, %v555_v28  ;;  %v601_v30 = vsub.f32 %v1789_v43, %v555_v28 }
 0x31e   : > { %1272 = vpow2.f32 %v632_v27 }
 0x31f   : > { %v634_v31 = vmul.f32 1.442695, %v600_v29  ;;  %v636_v32 = vmul.f32 1.442695, %v601_v30 }
 0x320   : > { %v558_v33 = vpop.xlane.xlu1 %557 }
 0x321   : > { %1274 = vpow2.f32 %v634_v31  ;;  %v602_v34 = vsub.f32 %v1793_v45, %v558_v33  ;;  %v603_v35 = vsub.f32 %v1795_v46, %v558_v33 }
 0x322   : > { %1276 = vpow2.f32 %v636_v32 }
 0x323   : > { %v638_v36 = vmul.f32 1.442695, %v602_v34  ;;  %v640_v37 = vmul.f32 1.442695, %v603_v35 }
 0x324   : > { %v561_v38 = vpop.xlane.xlu1 %560 }
 0x325   : > { %1278 = vpow2.f32 %v638_v36  ;;  %v604_v39 = vsub.f32 %v1797_v47, %v561_v38  ;;  %v605_v40 = vsub.f32 %v1801_v49, %v561_v38 }
 0x326   : > { %1280 = vpow2.f32 %v640_v37 }
 0x327   : > { %v1885_v41 = vpop.eup %1270  ;;  %v642_v42 = vmul.f32 1.442695, %v604_v39  ;;  %v644_v43 = vmul.f32 1.442695, %v605_v40 }
 0x328   : > { %v1887_v44 = vpop.eup %1272  ;;  %v564_v48 = vpop.xlane.xlu1 %563 }
 0x329   : > { %1282 = vpow2.f32 %v642_v42  ;;  %v606_v45 = vsub.f32 %v1805_v51, %v564_v48  ;;  %v607_v46 = vsub.f32 %v1807_v52, %v564_v48  ;;  %v694_v50 = vadd.f32 %v1887_v44, %v1885_v41 }
 0x32a   : > { %1284 = vpow2.f32 %v644_v43 }
 0x32b   : > { %v1893_v47 = vpop.eup %1274  ;;  %v646_v49 = vmul.f32 1.442695, %v606_v45  ;;  %v648_v54 = vmul.f32 1.442695, %v607_v46  ;;  %695 = vadd.xlane.f32.xlu1 %v694_v50 }
 0x32c   : > { %v1895_v56 = vpop.eup %1276  ;;  %v567_v60 = vpop.xlane.xlu1 %566 }
 0x32d   : > { %1286 = vpow2.f32 %v646_v49  ;;  %v608_v62 = vsub.f32 %v1809_v53, %v567_v60  ;;  %v609_v2 = vsub.f32 %v1813_v55, %v567_v60  ;;  %v697_v51 = vadd.f32 %v1895_v56, %v1893_v47 }
 0x32e   : > { %1288 = vpow2.f32 %v648_v54 }
 0x32f   : > { %v1901_v52 = vpop.eup %1278  ;;  %v650_v4 = vmul.f32 1.442695, %v608_v62  ;;  %v652_v8 = vmul.f32 1.442695, %v609_v2  ;;  %698 = vadd.xlane.f32.xlu1 %v697_v51 }
 0x330   : > { %v1903_v10 = vpop.eup %1280  ;;  %v570_v14 = vpop.xlane.xlu1 %569 }
 0x331   : > { %1290 = vpow2.f32 %v650_v4  ;;  %v610_v16 = vsub.f32 %v1817_v57, %v570_v14  ;;  %v611_v20 = vsub.f32 %v1819_v58, %v570_v14  ;;  %v700_v53 = vadd.f32 %v1903_v10, %v1901_v52 }
 0x332   : > { %1292 = vpow2.f32 %v652_v8 }
 0x333   : > { %v1909_v55 = vpop.eup %1282  ;;  %v654_v22 = vmul.f32 1.442695, %v610_v16  ;;  %v656_v23 = vmul.f32 1.442695, %v611_v20  ;;  %701 = vadd.xlane.f32.xlu1 %v700_v53 }
 0x334   : > { %v1911_v24 = vpop.eup %1284  ;;  %v573_v25 = vpop.xlane.xlu1 %572 }
 0x335   : > { %1294 = vpow2.f32 %v654_v22  ;;  %v612_v26 = vsub.f32 %v1821_v59, %v573_v25  ;;  %v613_v27 = vsub.f32 %v1825_v61, %v573_v25  ;;  %v703_v57 = vadd.f32 %v1911_v24, %v1909_v55 }
 0x336   : > { %1296 = vpow2.f32 %v656_v23 }
 0x337   : > { %v1917_v58 = vpop.eup %1286  ;;  %v658_v28 = vmul.f32 1.442695, %v612_v26  ;;  %v660_v29 = vmul.f32 1.442695, %v613_v27  ;;  %704 = vadd.xlane.f32.xlu1 %v703_v57 }
 0x338   : > { %v1919_v30 = vpop.eup %1288  ;;  %v576_v31 = vpop.xlane.xlu1 %575 }
 0x339   : > { %1298 = vpow2.f32 %v658_v28  ;;  %v614_v32 = vsub.f32 %v1829_v63, %v576_v31  ;;  %v615_v33 = vsub.f32 %v1831_v0, %v576_v31  ;;  %v706_v59 = vadd.f32 %v1919_v30, %v1917_v58 }
 0x33a   : > { %1300 = vpow2.f32 %v660_v29  ;;  %v579_v61 = vpop.xlane.xlu0 %578 }
 0x33b   : > { %v1925_v34 = vpop.eup %1290  ;;  %v662_v35 = vmul.f32 1.442695, %v614_v32  ;;  %v664_v36 = vmul.f32 1.442695, %v615_v33  ;;  %v616_v37 = vsub.f32 %v1833_v1, %v579_v61  ;;  %v617_v38 = vsub.f32 %v1837_v3, %v579_v61  ;;  %707 = vadd.xlane.f32.xlu1 %v706_v59 }
 0x33c   : > { %v1929_v39 = vpop.eup %1292 }
 0x33d   : > { %1302 = vpow2.f32 %v662_v35  ;;  %v666_v63 = vmul.f32 1.442695, %v616_v37  ;;  %v668_v40 = vmul.f32 1.442695, %v617_v38  ;;  %v709_v0 = vadd.f32 %v1929_v39, %v1925_v34 }
 0x33e   : > { %1304 = vpow2.f32 %v664_v36 }
 0x33f   : > { %v1933_v42 = vpop.eup %1294  ;;  %1306 = vpow2.f32 %v666_v63  ;;  %710 = vadd.xlane.f32.xlu1 %v709_v0 }
 0x340   : > { %v1935_v43 = vpop.eup %1296  ;;  %1308 = vpow2.f32 %v668_v40  ;;  %v582_v1 = vpop.xlane.xlu1 %581 }
 0x341   : > { %v618_v3 = vsub.f32 %v1841_v5, %v582_v1  ;;  %v619_v48 = vsub.f32 %v1843_v6, %v582_v1  ;;  %v712_v45 = vadd.f32 %v1935_v43, %v1933_v42 }
 0x343   : > { %v1941_v46 = vpop.eup %1298  ;;  %v670_v50 = vmul.f32 1.442695, %v618_v3  ;;  %v672_v49 = vmul.f32 1.442695, %v619_v48  ;;  %713 = vadd.xlane.f32.xlu1 %v712_v45 }
 0x344   : > { %v1943_v54 = vpop.eup %1300  ;;  %v585_v60 = vpop.xlane.xlu1 %584 }
 0x345   : > { %1310 = vpow2.f32 %v670_v50  ;;  %v620_v62 = vsub.f32 %v1845_v7, %v585_v60  ;;  %v621_v2 = vsub.f32 %v1849_v9, %v585_v60  ;;  %v715_v5 = vadd.f32 %v1943_v54, %v1941_v46 }
 0x346   : > { %1312 = vpow2.f32 %v672_v49 }
 0x347   : > { %v1949_v6 = vpop.eup %1302  ;;  %v674_v51 = vmul.f32 1.442695, %v620_v62  ;;  %v676_v4 = vmul.f32 1.442695, %v621_v2  ;;  %716 = vadd.xlane.f32.xlu1 %v715_v5 }
 0x348   : > { %v1951_v8 = vpop.eup %1304  ;;  %v588_v14 = vpop.xlane.xlu1 %587 }
 0x349   : > { %v1953_v16 = vpop.eup %1306  ;;  %1314 = vpow2.f32 %v674_v51  ;;  %v622_v20 = vsub.f32 %v1853_v11, %v588_v14  ;;  %v623_v7 = vsub.f32 %v1855_v12, %v588_v14  ;;  %v718_v9 = vadd.f32 %v1951_v8, %v1949_v6 }
 0x34a   : > { %v1959_v53 = vpop.eup %1308  ;;  %1316 = vpow2.f32 %v676_v4 }
 0x34b   : > { %v678_v22 = vmul.f32 1.442695, %v622_v20  ;;  %v680_v23 = vmul.f32 1.442695, %v623_v7  ;;  %719 = vadd.xlane.f32.xlu1 %v718_v9  ;;  %v721_v11 = vadd.f32 %v1959_v53, %v1953_v16 }
 0x34c   : > { %v591_v25 = vpop.xlane.xlu1 %590 }
 0x34d   : > { %1318 = vpow2.f32 %v678_v22  ;;  %v624_v26 = vsub.f32 %v1857_v13, %v591_v25  ;;  %v625_v27 = vsub.f32 %v1861_v15, %v591_v25 }
 0x34e   : > { %1320 = vpow2.f32 %v680_v23 }
 0x34f   : > { %v1965_v12 = vpop.eup %1310  ;;  %v682_v57 = vmul.f32 1.442695, %v624_v26  ;;  %v684_v28 = vmul.f32 1.442695, %v625_v27  ;;  %722 = vadd.xlane.f32.xlu1 %v721_v11 }
 0x350   : > { %v1967_v29 = vpop.eup %1312  ;;  %v594_v31 = vpop.xlane.xlu1 %593 }
 0x351   : > { %1322 = vpow2.f32 %v682_v57  ;;  %v626_v32 = vsub.f32 %v1865_v17, %v594_v31  ;;  %v627_v33 = vsub.f32 %v1867_v18, %v594_v31  ;;  %v724_v13 = vadd.f32 %v1967_v29, %v1965_v12 }
 0x352   : > { %1324 = vpow2.f32 %v684_v28 }
 0x353   : > { %v1973_v15 = vpop.eup %1314  ;;  %v686_v59 = vmul.f32 1.442695, %v626_v32  ;;  %v688_v61 = vmul.f32 1.442695, %v627_v33  ;;  %725 = vadd.xlane.f32.xlu1 %v724_v13 }
 0x354   : > { %v1975_v35 = vpop.eup %1316  ;;  %v597_v36 = vpop.xlane.xlu1 %596 }
 0x355   : > { %1326 = vpow2.f32 %v686_v59  ;;  %v628_v37 = vsub.f32 %v1869_v19, %v597_v36  ;;  %v629_v38 = vsub.f32 %v1873_v21, %v597_v36  ;;  %v727_v17 = vadd.f32 %v1975_v35, %v1973_v15 }
 0x356   : > { %1328 = vpow2.f32 %v688_v61 }
 0x357   : > { %v1981_v18 = vpop.eup %1318  ;;  %v690_v63 = vmul.f32 1.442695, %v628_v37  ;;  %v692_v40 = vmul.f32 1.442695, %v629_v38  ;;  %728 = vadd.xlane.f32.xlu1 %v727_v17 }
 0x358   : > { %v1983_v0 = vpop.eup %1320 }
 0x359   : > { %1330 = vpow2.f32 %v690_v63  ;;  %v730_v1 = vadd.f32 %v1983_v0, %v1981_v18 }
 0x35a   : > { %1332 = vpow2.f32 %v692_v40 }
 0x35b   : > { %v1987_v19 = vpop.eup %1322  ;;  %731 = vadd.xlane.f32.xlu1 %v730_v1 }
 0x35c   : > { %v1989_v21 = vpop.eup %1324 }
 0x35d   : > { %v733_v3 = vadd.f32 %v1989_v21, %v1987_v19 }
 0x35f   : > { %v1993_v48 = vpop.eup %1326  ;;  %734 = vadd.xlane.f32.xlu1 %v733_v3 }
 0x360   : > { %v1995_v45 = vpop.eup %1328 }
 0x361   : > { %v736_v50 = vadd.f32 %v1995_v45, %v1993_v48 }
 0x363   : > { %v1999_v49 = vpop.eup %1330  ;;  %737 = vadd.xlane.f32.xlu1 %v736_v50 }
 0x364   : > { %v2001_v60 = vpop.eup %1332 }
 0x365   : > { %v739_v62 = vadd.f32 %v2001_v60, %v1999_v49 }
 0x367   : > { %740 = vadd.xlane.f32.xlu1 %v739_v62 }
 0x368   : > { %1409 = shalt.err (!%p1406_p13)
}
 0x369   : > { %s1410_s1 = scalar_lea.hbm %s2011_s27, 64  ;;  %s1414_s12 = scalar_lea.hbm %s2157_s4, 256 }
 0x36a   : > { %p1411_p0 = scmp.ne.s32.totalorder %s2011_s27, %s1410_s1  ;;  %p1415_p9 = scmp.lt.u32.totalorder %s2011_s27, %s2157_s4 }
 0x36b   : > { %p1416_p12 = scmp.lt.u32.totalorder %s1414_s12, %s1410_s1  ;;  %p1418_p7 = scmp.lt.u32.totalorder %s1410_s1, %s2011_s27 }
 0x36c   : > { %p1412_p5 = pnand %p1411_p0, %p2177_p4 }
 0x36d   : > { %p1417_p2 = por %p1416_p12, %p1415_p9 }
 0x36e   : > { %p1413_p6 = pneg %p1412_p5 }
 0x36f   : > { %p1419_p11 = por %p1418_p7, %p1417_p2 }
 0x371   : > { %p1420_p1 = pnand %p1419_p11, %p1413_p6 }
 0x373   : > { %1423 = shalt.err (!%p1420_p1)
}
 0x374   : > { %1159 = dma.vmem_to_hbm [thread:$0]  (%p2177_p4), %s925_s7, 64, %s2011_s27, %s904_s13  }
 0x375   : > { %s1089_s0 = sshll.u32 %s1761_s6, 7  ;;  %s1146_s7 = sshll.u32 %s1534_s24, 5 }
 0x376   : > { %s2034_s9 = scalar_lea.vmem [#allocation6], %s1089_s0  ;;  %s1125_s27 = sshll.u32 %s1538_s25, 6 }
 0x377   : > { %s937_s13 = sadd.s32 %s1146_s7, %s1125_s27  ;;  %s940_s8 = sshll.u32 %s2034_s9, 4  ;;  %s2084_s8 = int_to_ptr.vmem [resolvable:$true] %s940_s8 }
 0x378   : > { %s1126_s11 = sshll.u32 %s937_s13, 6  ;;  %s909_s29 = scalar_lea.sflag [#allocation7], %s1761_s6 }
 0x379   : > { %s2089_s1 = scalar_lea.hbm %s2158_s5, %s1126_s11  ;;  %s1424_s30 = scalar_lea.vmem %s2084_s8, 2048 }
 0x37a   : > { %p1425_p8 = scmp.ne.s32.totalorder %s2084_s8, %s1424_s30  ;;  %s1557_s12 = smov [#allocation6]  }
 0x37b   : > { %s1428_s10 = sshll.u32 %s1557_s12, 4  ;;  %s1429_s10 = int_to_ptr.vmem [resolvable:$false] %s1428_s10 }
 0x37c   : > { %p1426_p10 = pnand %p1425_p8, %p2177_p4  ;;  %s1430_s14 = scalar_lea.vmem %s1429_s10, 4096 }
 0x37d   : > { %p1431_p13 = scmp.lt.s32.totalorder %s2084_s8, %s1429_s10  ;;  %p1432_p0 = scmp.lt.s32.totalorder %s1430_s14, %s1424_s30 }
 0x37e   : > { %p1427_p3 = pneg %p1426_p10 }
 0x37f   : > { %p1433_p5 = por %p1432_p0, %p1431_p13 }
 0x381   : > { %p1434_p6 = pnand %p1433_p5, %p1427_p3 }
 0x3b8   : > { %v696_v2 = vpop.xlane.xlu1 %695 }
 0x3b9   : > { %1334 = vrcp.f32 %v696_v2 }
 0x3bc   : > { %v699_v5 = vpop.xlane.xlu1 %698 }
 0x3bd   : > { %1336 = vrcp.f32 %v699_v5 }
 0x3c0   : > { %v702_v51 = vpop.xlane.xlu1 %701 }
 0x3c1   : > { %1338 = vrcp.f32 %v702_v51 }
 0x3c3   : > { %v1335_v4 = vpop.eup %1334 }
 0x3c4   : > { %v758_v14 = vmul.f32 %v1335_v4, %v1885_v41  ;;  %v759_v20 = vmul.f32 %v1335_v4, %v1887_v44  ;;  %v705_v7 = vpop.xlane.xlu1 %704 }
 0x3c5   : > { %1340 = vrcp.f32 %v705_v7 }
 0x3c6   : > { %v1130_v9 = vpack.c.bf16 %v759_v20, %v758_v14 }
 0x3c7   : > { %v1337_v22 = vpop.eup %1336 }
 0x3c8   : > { %886 = vst [vmem:[%s2034_s9] sm:$0xff] %v1130_v9  ;;  %v760_v23 = vmul.f32 %v1337_v22, %v1893_v47  ;;  %v761_v25 = vmul.f32 %v1337_v22, %v1895_v56  ;;  %v708_v26 = vpop.xlane.xlu1 %707 }
 0x3c9   : > { %1342 = vrcp.f32 %v708_v26 }
 0x3ca   : > { %v1131_v27 = vpack.c.bf16 %v761_v25, %v760_v23 }
 0x3cb   : > { %v1339_v41 = vpop.eup %1338 }
 0x3cc   : > { %887 = vst [vmem:[%s2034_s9 + $0x8] sm:$0xff] %v1131_v27  ;;  %v762_v44 = vmul.f32 %v1339_v41, %v1901_v52  ;;  %v763_v11 = vmul.f32 %v1339_v41, %v1903_v10  ;;  %v711_v57 = vpop.xlane.xlu1 %710 }
 0x3cd   : > { %1344 = vrcp.f32 %v711_v57 }
 0x3ce   : > { %v1132_v28 = vpack.c.bf16 %v763_v11, %v762_v44 }
 0x3cf   : > { %v1341_v31 = vpop.eup %1340 }
 0x3d0   : > { %888 = vst [vmem:[%s2034_s9 + $0x10] sm:$0xff] %v1132_v28  ;;  %v764_v47 = vmul.f32 %v1341_v31, %v1909_v55  ;;  %v765_v56 = vmul.f32 %v1341_v31, %v1911_v24  ;;  %v714_v32 = vpop.xlane.xlu1 %713 }
 0x3d1   : > { %1346 = vrcp.f32 %v714_v32 }
 0x3d2   : > { %v1133_v33 = vpack.c.bf16 %v765_v56, %v764_v47 }
 0x3d3   : > { %v1343_v13 = vpop.eup %1342 }
 0x3d4   : > { %889 = vst [vmem:[%s2034_s9 + $0x18] sm:$0xff] %v1133_v33  ;;  %v766_v52 = vmul.f32 %v1343_v13, %v1917_v58  ;;  %v767_v10 = vmul.f32 %v1343_v13, %v1919_v30  ;;  %v717_v59 = vpop.xlane.xlu1 %716 }
 0x3d5   : > { %1348 = vrcp.f32 %v717_v59 }
 0x3d6   : > { %v1134_v61 = vpack.c.bf16 %v767_v10, %v766_v52 }
 0x3d7   : > { %v1345_v36 = vpop.eup %1344 }
 0x3d8   : > { %890 = vst [vmem:[%s2034_s9 + $0x20] sm:$0xff] %v1134_v61  ;;  %v768_v55 = vmul.f32 %v1345_v36, %v1925_v34  ;;  %v769_v24 = vmul.f32 %v1345_v36, %v1929_v39  ;;  %v720_v37 = vpop.xlane.xlu1 %719 }
 0x3d9   : > { %1350 = vrcp.f32 %v720_v37 }
 0x3da   : > { %v1135_v38 = vpack.c.bf16 %v769_v24, %v768_v55 }
 0x3db   : > { %v1347_v17 = vpop.eup %1346 }
 0x3dc   : > { %891 = vst [vmem:[%s2034_s9 + $0x28] sm:$0xff] %v1135_v38  ;;  %v770_v58 = vmul.f32 %v1347_v17, %v1933_v42  ;;  %v771_v30 = vmul.f32 %v1347_v17, %v1935_v43  ;;  %v723_v63 = vpop.xlane.xlu1 %722 }
 0x3dd   : > { %1352 = vrcp.f32 %v723_v63 }
 0x3de   : > { %v1136_v40 = vpack.c.bf16 %v771_v30, %v770_v58 }
 0x3df   : > { %v1349_v1 = vpop.eup %1348 }
 0x3e0   : > { %892 = vst [vmem:[%s2034_s9 + $0x30] sm:$0xff] %v1136_v40  ;;  %v772_v34 = vmul.f32 %v1349_v1, %v1941_v46  ;;  %v773_v39 = vmul.f32 %v1349_v1, %v1943_v54  ;;  %v726_v3 = vpop.xlane.xlu1 %725 }
 0x3e1   : > { %1354 = vrcp.f32 %v726_v3 }
 0x3e2   : > { %v1137_v50 = vpack.c.bf16 %v773_v39, %v772_v34 }
 0x3e3   : > { %v1351_v62 = vpop.eup %1350 }
 0x3e4   : > { %893 = vst [vmem:[%s2034_s9 + $0x38] sm:$0xff] %v1137_v50  ;;  %v774_v42 = vmul.f32 %v1351_v62, %v1949_v6  ;;  %v775_v43 = vmul.f32 %v1351_v62, %v1951_v8  ;;  %v729_v2 = vpop.xlane.xlu1 %728 }
 0x3e5   : > { %1356 = vrcp.f32 %v729_v2 }
 0x3e6   : > { %v1138_v5 = vpack.c.bf16 %v775_v43, %v774_v42 }
 0x3e7   : > { %v1353_v51 = vpop.eup %1352 }
 0x3e8   : > { %894 = vst [vmem:[%s2034_s9 + $0x40] sm:$0xff] %v1138_v5  ;;  %v776_v46 = vmul.f32 %v1353_v51, %v1953_v16  ;;  %v777_v54 = vmul.f32 %v1353_v51, %v1959_v53  ;;  %v732_v4 = vpop.xlane.xlu1 %731 }
 0x3e9   : > { %1358 = vrcp.f32 %v732_v4 }
 0x3ea   : > { %v1139_v14 = vpack.c.bf16 %v777_v54, %v776_v46 }
 0x3eb   : > { %v1355_v20 = vpop.eup %1354 }
 0x3ec   : > { %895 = vst [vmem:[%s2034_s9 + $0x48] sm:$0xff] %v1139_v14  ;;  %v778_v6 = vmul.f32 %v1355_v20, %v1965_v12  ;;  %v779_v8 = vmul.f32 %v1355_v20, %v1967_v29  ;;  %v735_v7 = vpop.xlane.xlu1 %734 }
 0x3ed   : > { %1360 = vrcp.f32 %v735_v7 }
 0x3ee   : > { %v1140_v9 = vpack.c.bf16 %v779_v8, %v778_v6 }
 0x3ef   : > { %v1357_v22 = vpop.eup %1356 }
 0x3f0   : > { %896 = vst [vmem:[%s2034_s9 + $0x50] sm:$0xff] %v1140_v9  ;;  %v780_v16 = vmul.f32 %v1357_v22, %v1973_v15  ;;  %v781_v53 = vmul.f32 %v1357_v22, %v1975_v35  ;;  %v738_v23 = vpop.xlane.xlu1 %737 }
 0x3f1   : > { %1362 = vrcp.f32 %v738_v23 }
 0x3f2   : > { %v1141_v25 = vpack.c.bf16 %v781_v53, %v780_v16 }
 0x3f3   : > { %v1359_v26 = vpop.eup %1358 }
 0x3f4   : > { %897 = vst [vmem:[%s2034_s9 + $0x58] sm:$0xff] %v1141_v25  ;;  %v782_v12 = vmul.f32 %v1359_v26, %v1981_v18  ;;  %v783_v29 = vmul.f32 %v1359_v26, %v1983_v0  ;;  %v741_v27 = vpop.xlane.xlu1 %740 }
 0x3f5   : > { %1364 = vrcp.f32 %v741_v27 }
 0x3f6   : > { %v1142_v41 = vpack.c.bf16 %v783_v29, %v782_v12 }
 0x3f7   : > { %v1361_v44 = vpop.eup %1360 }
 0x3f8   : > { %898 = vst [vmem:[%s2034_s9 + $0x60] sm:$0xff] %v1142_v41  ;;  %v784_v15 = vmul.f32 %v1361_v44, %v1987_v19  ;;  %v785_v35 = vmul.f32 %v1361_v44, %v1989_v21 }
 0x3fa   : > { %v1143_v11 = vpack.c.bf16 %v785_v35, %v784_v15 }
 0x3fb   : > { %v1363_v57 = vpop.eup %1362 }
 0x3fc   : > { %899 = vst [vmem:[%s2034_s9 + $0x68] sm:$0xff] %v1143_v11  ;;  %v786_v18 = vmul.f32 %v1363_v57, %v1993_v48  ;;  %v787_v0 = vmul.f32 %v1363_v57, %v1995_v45 }
 0x3fe   : > { %v1144_v28 = vpack.c.bf16 %v787_v0, %v786_v18 }
 0x3ff   : > { %v1365_v31 = vpop.eup %1364 }
 0x400   : > { %900 = vst [vmem:[%s2034_s9 + $0x70] sm:$0xff] %v1144_v28  ;;  %v788_v19 = vmul.f32 %v1365_v31, %v1999_v49  ;;  %v789_v21 = vmul.f32 %v1365_v31, %v2001_v60 }
 0x402   : > { %v1145_v47 = vpack.c.bf16 %v789_v21, %v788_v19 }
 0x404   : > { %901 = vst [vmem:[%s2034_s9 + $0x78] sm:$0xff] %v1145_v47 }
 0x405   : > { %1437 = shalt.err (!%p1434_p6)
}
 0x406   : > { %s1438_s0 = scalar_lea.hbm %s2089_s1, 2048  ;;  %s1442_s27 = scalar_lea.hbm %s2158_s5, 8192 }
 0x407   : > { %p1439_p9 = scmp.ne.s32.totalorder %s2089_s1, %s1438_s0  ;;  %p1443_p7 = scmp.lt.u32.totalorder %s2089_s1, %s2158_s5 }
 0x408   : > { %p1444_p11 = scmp.lt.u32.totalorder %s1442_s27, %s1438_s0  ;;  %p1446_p8 = scmp.lt.u32.totalorder %s1438_s0, %s2089_s1 }
 0x409   : > { %p1440_p12 = pnand %p1439_p9, %p2177_p4 }
 0x40a   : > { %p1445_p1 = por %p1444_p11, %p1443_p7 }
 0x40b   : > { %p1441_p2 = pneg %p1440_p12 }
 0x40c   : > { %p1447_p10 = por %p1446_p8, %p1445_p1 }
 0x40e   : > { %p1448_p3 = pnand %p1447_p10, %p1441_p2 }
 0x410   : > { %1451 = shalt.err (!%p1448_p3)
}
 0x411   : > { %s1558_s24 = smov 128   ;;  %s1559_s25 = smov 8  }
 0x412   : > { %1160 = dma.vmem_to_hbm [thread:$0]  (%p2177_p4), %s2084_s8, 2048, %s2089_s1, %s909_s29, %s1558_s24, %s1558_s24, %s1559_s25  }
 0x413 PF: > { %p1175_p13 = scmp.ge.s32.totalorder %s1550_s28, 2  ;;  %s955_s30 = sand.u32 1, %s1510_s18  }
 0x414   : > { %p2178_p0 = scmp.ne.s32.totalorder %s2171_s21, 0  ;;  %s956_s12 = scalar_lea.sflag [#allocation4], %s955_s30 }
 0x416   : > { %p1168_p5 = pnand %p1175_p13, %p2178_p0 }
 0x418   : > { %1501 = dma.done.wait (!%p1168_p5), %s956_s12, 64  }
 0x419   : > { %1503 = vsyncadd (!%p1168_p5), %s956_s12, 4294967232  ;;  %s965_s10 = scalar_lea.sflag [#allocation7], %s955_s30 }
 0x41a   : > { %1505 = dma.done.wait (!%p1168_p5), %s965_s10, 2048  }
 0x41b   : > { %1507 = vsyncadd (!%p1168_p5), %s965_s10, 4294965248  ;;  %s25_s28 = sadd.s32 1, %s1550_s28   ;;  %s2179_s25 = sld [smem:[#allocation11_spill]] }
 0x41c   : > { %p22_p6 = scmp.ge.s32.totalorder %s25_s28, 6   ;;  %s2180_s15 = sld [smem:[#allocation12_spill]] }
 0x41d   : > { %s2181_s27 = sld [smem:[#allocation13_spill]]  ;;  %s2182_s18 = smov %s1514_s19 }
 0x41e   : > { %s2183_s19 = smov %s1518_s20  ;;  %s2184_s20 = smov %s1680_s17 }
 0x41f   : > { %s2185_s21 = smov %s1526_s22  ;;  %s2186_s22 = smov %s1530_s23 }
 0x420   : > { %s2187_s23 = smov %s1677_s16  ;;  %s2188_s24 = smov %s1542_s26 }
 0x421   :  { %24 = sbr.rel (!%p22_p6) target bundleno = 14 (0xe), region = 101 }
 0x422   : > { %s2189_s26 = smov %s2180_s15 }
 0x428   :  { %970 = vsyncpa [#allocation3], 1 }
 0x429   :  { %972 = vsyncpa [#allocation3 + $0x1], 1 }
 0x42a   :  { %973 = vsyncpa [#allocation4], 1 }
 0x42b   :  { %975 = vsyncpa [#allocation4 + $0x1], 1 }
 0x42c   :  { %976 = vsyncpa [#allocation7], 1 }
 0x42d   :  { %978 = vsyncpa [#allocation7 + $0x1], 1 }

</bundles_post_ra>
